<compile_context>
chip_gen: v7x
topology: tpu7x:2x2x1
jax: 0.10.0
libtpu: 0.0.40
codegen_flags: <defaults>
</compile_context>

<pallas_src>
import jax
import jax.numpy as jnp
from jax.experimental import pallas as pl
from jax.experimental.pallas import tpu as pltpu

_LANE = 128
_SUBLANE = 8


def _matmul_kernel(x_ref, w_ref, o_ref):
    # Single MXU matmul on the resident tiles; accumulate in f32.
    o_ref[...] = jnp.dot(
        x_ref[...], w_ref[...], preferred_element_type=jnp.float32
    ).astype(o_ref.dtype)


def _round_up(x, m):
    return (x + m - 1) // m * m


def linear_forward(x, w, *, tm=None):
    """Compute x @ w with a Pallas kernel.

    x: (M, K) float32
    w: (K, N) float32
    Returns (M, N) float32.
    """
    M, K = x.shape
    K2, N = w.shape
    assert K == K2

    # Pad to a lane-dense output (N -> multiple of 128) and sublane-legal rows.
    Np = _round_up(N, _LANE)
    Mp = _round_up(M, _SUBLANE)
    x_p = x if Mp == M else jnp.pad(x, ((0, Mp - M), (0, 0)))
    w_p = w if Np == N else jnp.pad(w, ((0, 0), (0, Np - N)))

    cost = pl.CostEstimate(
        flops=2 * Mp * K * Np,
        transcendentals=0,
        bytes_accessed=4 * (Mp * K + K * Np + Mp * Np),
    )

    # ---- Small-problem fast path: no grid, everything in VMEM at once. ----
    total_bytes = 4 * (Mp * K + K * Np + Mp * Np)
    if tm is None and total_bytes <= 16 * 1024 * 1024:
        out_p = pl.pallas_call(
            _matmul_kernel,
            out_shape=jax.ShapeDtypeStruct((Mp, Np), x.dtype),
            in_specs=[
                pl.BlockSpec(memory_space=pltpu.MemorySpace.VMEM),
                pl.BlockSpec(memory_space=pltpu.MemorySpace.VMEM),
            ],
            out_specs=pl.BlockSpec(memory_space=pltpu.MemorySpace.VMEM),
            cost_estimate=cost,
        )(x_p, w_p)
        return out_p[:M, :N]

    # ---- Large-batch path: tile over M only (K, Np stay whole). ----
    if tm is None:
        # >= 2 parallel grid steps (v7x has 2 TCs), tile rows a multiple of 8,
        # capped so double-buffered (x tile + out tile) stays well under the
        # default scoped VMEM limit on every generation (incl. v7x's 64 MiB).
        tm = min(max(Mp // 2, _SUBLANE), 2048)
        tm = max(_SUBLANE, (tm // _SUBLANE) * _SUBLANE)
    # Re-pad rows so the grid divides evenly.
    Mp2 = _round_up(Mp, tm)
    if Mp2 != Mp:
        x_p = jnp.pad(x_p, ((0, Mp2 - Mp), (0, 0)))
        Mp = Mp2

    grid = (Mp // tm,)
    out_p = pl.pallas_call(
        _matmul_kernel,
        out_shape=jax.ShapeDtypeStruct((Mp, Np), x.dtype),
        grid_spec=pltpu.PrefetchScalarGridSpec(
            num_scalar_prefetch=0,
            grid=grid,
            in_specs=[
                pl.BlockSpec((tm, K), lambda i: (i, 0)),   # x rows i*tm..+tm
                pl.BlockSpec((K, Np), lambda i: (0, 0)),   # w resident (constant block)
            ],
            out_specs=pl.BlockSpec((tm, Np), lambda i: (i, 0)),
        ),
        compiler_params=pltpu.CompilerParams(
            dimension_semantics=("parallel",),
        ),
        cost_estimate=cost,
    )(x_p, w_p)
    return out_p[:M, :N]


if __name__ == "__main__":
    key = jax.random.PRNGKey(0)
    k_x, k_w = jax.random.split(key)

    batch = 16
    ndim = 64
    class_num = 10

    # Input
    x = jax.random.normal(k_x, (batch, ndim), dtype=jnp.float32)

    # Parameter init matching torch.rand(ndim, class_num) * 0.2 - 0.1
    w = jax.random.uniform(
        k_w, (ndim, class_num), dtype=jnp.float32, minval=-0.1, maxval=0.1
    )

    out = jax.block_until_ready(linear_forward(x, w))

    # Sanity check against plain JAX reference
    ref = x @ w
    assert out.shape == (batch, class_num)
    assert jnp.allclose(out, ref, atol=1e-5, rtol=1e-5)

    # Also exercise the tiled path once (forced small tm) for coverage.
    out_tiled = jax.block_until_ready(linear_forward(x, w, tm=8))
    assert jnp.allclose(out_tiled, ref, atol=1e-5, rtol=1e-5)

    print("KERNEL_OK")
</pallas_src>

<mosaic_0001>
module attributes {stable_mosaic.version = 11 : i64} {
  func.func @_matmul_kernel(%arg0: memref<16x64xf32, #tpu.memory_space<vmem>>, %arg1: memref<64x128xf32, #tpu.memory_space<vmem>>, %arg2: memref<16x128xf32, #tpu.memory_space<vmem>>) attributes {dimension_semantics = [], scalar_prefetch = 0 : i64, scratch_operands = 0 : i64, tpu.core_type = #tpu.core_type<tc>} {
    %c0 = arith.constant 0 : index
    %c0_0 = arith.constant 0 : index
    %0 = vector.load %arg0[%c0, %c0_0] : memref<16x64xf32, #tpu.memory_space<vmem>>, vector<16x64xf32>
    %c0_1 = arith.constant 0 : index
    %c0_2 = arith.constant 0 : index
    %1 = vector.load %arg1[%c0_1, %c0_2] : memref<64x128xf32, #tpu.memory_space<vmem>>, vector<64x128xf32>
    %cst = arith.constant dense<0.000000e+00> : vector<16x128xf32>
    %2 = tpu.matmul %0, %1, %cst {dimension_numbers = #tpu.dot_dimension_numbers<[1], [0], [0], [1], [0, 0, 1, 1], [], []>} : vector<16x64xf32>, vector<64x128xf32>, vector<16x128xf32> -> vector<16x128xf32>
    %c0_3 = arith.constant 0 : index
    %c0_4 = arith.constant 0 : index
    %3 = vector.load %arg2[%c0_3, %c0_4] : memref<16x128xf32, #tpu.memory_space<vmem>>, vector<16x128xf32>
    tpu.vector_store %arg2[%c0_3, %c0_4], %2 {strides = array<i32>} : memref<16x128xf32, #tpu.memory_space<vmem>>, vector<16x128xf32>,
    return
  }
}

</mosaic_0001>

<bundles_post_ra>
// kernel: tpu_custom_call.1
= control target key start
LH: loop header
LB: loop body
LE: loop exit
PB: predicated region body
PF: predicated region fallthrough
CT: control target
= control target key end

     0   :  { %7 = vsyncpa [#allocation3], 0  ;;  %s343_s0 = inlined_call_operand.hbm [shape: f32[16,64], index: 0, kind: input, shape index: {}]   ;;  %s344_s1 = inlined_call_operand.hbm [shape: f32[64,128], index: 1, kind: input, shape index: {}]   ;;  %s345_s2 = inlined_call_operand.hbm [shape: f32[16,128], index: 2, kind: output, shape index: {}]  }
   0x1   :  { %8 = vsyncpa [#allocation6], 0 }
   0x2   :  { %9 = vsyncpa [#allocation4], 0  ;;  %s276_s9 = smov [#allocation2]   ;;  %s204_s13 = scalar_lea.hbm %s343_s0, 256 }
   0x3   :  { %s15_s10 = sshll.u32 %s276_s9, 4  ;;  %p205_p0 = scmp.ne.s32.totalorder %s343_s0, %s204_s13  ;;  %s16_s10 = int_to_ptr.vmem [resolvable:$true] %s15_s10 }
   0x4   :  { %p208_p1 = scmp.lt.u32.totalorder %s204_s13, %s343_s0 }
   0x6   :  { %p210_p2 = pnand %p208_p1, %p205_p0 }
   0x8   :  { %213 = shalt.err (!%p210_p2)
}
   0x9   :  { %s214_s18 = scalar_lea.vmem %s16_s10, 256  ;;  %p219_p4 = scmp.lt.s32.totalorder %s16_s10, %s16_s10 }
   0xa   :  { %p215_p3 = scmp.ne.s32.totalorder %s16_s10, %s214_s18  ;;  %p220_p5 = scmp.lt.s32.totalorder %s214_s18, %s214_s18 }
   0xc   :  { %p221_p6 = por %p220_p5, %p219_p4 }
   0xe   :  { %p222_p7 = pnand %p221_p6, %p215_p3 }
  0x10   :  { %225 = shalt.err (!%p222_p7)
}
  0x11   :  { %s277_s19 = smov 128   ;;  %s278_s20 = smov 8  }
  0x12   :  { %21 = dma.hbm_to_vmem [thread:$0]  %s343_s0, 256, %s16_s10, [#allocation3], %s277_s19, %s277_s19, %s278_s20  }
  0x13   :  { %s279_s23 = smov [#allocation5]   ;;  %s226_s27 = scalar_lea.hbm %s344_s1, 1024 }
  0x14   :  { %s27_s24 = sshll.u32 %s279_s23, 4  ;;  %p227_p8 = scmp.ne.s32.totalorder %s344_s1, %s226_s27  ;;  %s28_s24 = int_to_ptr.vmem [resolvable:$true] %s27_s24 }
  0x15   :  { %p230_p9 = scmp.lt.u32.totalorder %s226_s27, %s344_s1 }
  0x17   :  { %p232_p10 = pnand %p230_p9, %p227_p8 }
  0x19   :  { %235 = shalt.err (!%p232_p10)
}
  0x1a   :  { %s236_s4 = scalar_lea.vmem %s28_s24, 1024  ;;  %p241_p12 = scmp.lt.s32.totalorder %s28_s24, %s28_s24 }
  0x1b   :  { %p237_p11 = scmp.ne.s32.totalorder %s28_s24, %s236_s4  ;;  %p242_p13 = scmp.lt.s32.totalorder %s236_s4, %s236_s4 }
  0x1d   :  { %p243_p0 = por %p242_p13, %p241_p12 }
  0x1f   :  { %p244_p1 = pnand %p243_p0, %p237_p11 }
  0x21   :  { %247 = shalt.err (!%p244_p1)
}
  0x22   :  { %33 = dma.hbm_to_vmem [thread:$0]  %s344_s1, 1024, %s28_s24, [#allocation6], %s277_s19, %s277_s19, %s278_s20  }
  0x23   :  { %270 = dma.done.wait [#allocation3], 256  }
  0x24   :  { %271 = vsyncadd [#allocation3], 4294967040 }
  0x25   :  { %272 = dma.done.wait [#allocation6], 1024  }
  0x26   :  { %273 = vsyncadd [#allocation6], 4294966272  ;;  %v42_v0 = vld [vmem:[#allocation5] sm:$0xff]  ;;  %v43_v1 = vld [vmem:[#allocation5 + $0x8] sm:$0xff]  ;;  %vm50_vm0 = vcmask 523264   ;;  %s280_s1 = smov [#allocation7]  }
  0x27   :  { %v44_v2 = vld [vmem:[#allocation5 + $0x10] sm:$0xff]  ;;  %v183_v3 = vpack.c.bf16 %v43_v1, %v42_v0  ;;  %v45_v4 = vld [vmem:[#allocation5 + $0x18] sm:$0xff]  ;;  %v46_v6 = vld [vmem:[#allocation5 + $0x20] sm:$0xff]  ;;  %s139_s6 = sshll.u32 %s280_s1, 4  ;;  %s140_s6 = int_to_ptr.vmem [resolvable:$true] %s139_s6 }
  0x28   :  { %v187_v5 = vpack.c.bf16 %v45_v4, %v44_v2  ;;  %v47_v7 = vld [vmem:[#allocation5 + $0x28] sm:$0xff]  ;;  %v40_v8 = vld [vmem:[#allocation2] sm:$0xff]  ;;  %v49_v11 = vld [vmem:[#allocation5 + $0x38] sm:$0xff]  ;;  %s248_s7 = scalar_lea.vmem %s140_s6, 256  ;;  %p253_p3 = scmp.lt.s32.totalorder %s140_s6, %s140_s6 }
  0x29   :  { %184 = vmatprep.subr.bf16.mxu0 %v183_v3  ;;  %180 = vmatprep.mubr.msk.f32.mxu0 %vm50_vm0, %v40_v8  ;;  %v191_v9 = vpack.c.bf16 %v47_v7, %v46_v6  ;;  %v48_v10 = vld [vmem:[#allocation5 + $0x30] sm:$0xff]  ;;  %v41_v13 = vld [vmem:[#allocation2 + $0x8] sm:$0xff]  ;;  %p249_p2 = scmp.ne.s32.totalorder %s140_s6, %s248_s7  ;;  %p254_p4 = scmp.lt.s32.totalorder %s248_s7, %s248_s7 }
  0x2a   :  { %186 = vmatpush3.bf16.msra.mxu0 %v183_v3  ;;  %v195_v12 = vpack.c.bf16 %v49_v11, %v48_v10 }
  0x2b   :  { %188 = vmatprep.subr.bf16.mxu0 %v187_v5  ;;  %p255_p5 = por %p254_p4, %p253_p3 }
  0x2d   :  { %p256_p6 = pnand %p255_p5, %p249_p2 }
  0x2e   :  { %190 = vmatpush3.bf16.msra.mxu0 %v187_v5 }
  0x2f   :  { %192 = vmatprep.subr.bf16.mxu0 %v191_v9 }
  0x32   :  { %194 = vmatpush3.bf16.msra.mxu0 %v191_v9 }
  0x33   :  { %196 = vmatprep.subr.bf16.mxu0 %v195_v12 }
  0x36   :  { %198 = vmatpush3.bf16.msra.mxu0 %v195_v12 }
  0x39   :  { %181 = vmatmul.mubr.msk.f32.vlgmr.msra.gmra.mrb[0].mxu0 %vm50_vm0, %v41_v13 }
 0x10c   :  { %v182_v14 = vpop.f32.mrb[0].mxu0 }
 0x10d   :  { %133 = vst [vmem:[#allocation7 + $0x8] sm:$0xff] %v182_v14  ;;  %v123_v15 = vpop.f32.mrb[1].mxu0 }
 0x10e   :  { %132 = vst [vmem:[#allocation7] sm:$0xff] %v123_v15 }
 0x10f   :  { %259 = shalt.err (!%p256_p6)
}
 0x110   :  { %s260_s10 = scalar_lea.hbm %s345_s2, 256 }
 0x111   :  { %p261_p7 = scmp.ne.s32.totalorder %s345_s2, %s260_s10  ;;  %p264_p8 = scmp.lt.u32.totalorder %s260_s10, %s345_s2 }
 0x113   :  { %p266_p9 = pnand %p264_p8, %p261_p7 }
 0x115   :  { %269 = shalt.err (!%p266_p9)
}
 0x116   :  { %145 = dma.vmem_to_hbm [thread:$0]  %s140_s6, 256, %s345_s2, [#allocation4], %s277_s19, %s277_s19, %s278_s20  }
 0x117   :  { %274 = dma.done.wait [#allocation4], 256  }
 0x118   :  { %275 = vsyncadd [#allocation4], 4294967040 }
 0x119   :  { %149 = vsyncpa [#allocation3], 1 }
 0x11a   :  { %150 = vsyncpa [#allocation6], 1 }
 0x11b   :  { %151 = vsyncpa [#allocation4], 1 }

</bundles_post_ra>
